<compile_context>
chip_gen: v7x
topology: tpu7x:2x2x1
jax: 0.10.0
libtpu: 0.0.40
codegen_flags: <defaults>
</compile_context>

<pallas_src>
import functools

import jax
import jax.numpy as jnp
from jax.experimental import pallas as pl
from jax.experimental.pallas import tpu as pltpu

_NEG = -1e30  # f32-representable "minus infinity" for padding / init


def _round_up(x, m):
    return ((x + m - 1) // m) * m


def _ca_loss_kernel(hit_ref, x_ref, lbl_ref, loss_ref, m_acc, l_acc, tgt_acc,
                    *, block_b, block_c, num_rows, num_cols):
    i = pl.program_id(0)          # row (batch) tile   -- "parallel"
    j = pl.program_id(1)          # column (class) tile -- reduction, "arbitrary"

    @pl.when(j == 0)
    def _init():
        m_acc[...] = jnp.full_like(m_acc, _NEG)
        l_acc[...] = jnp.zeros_like(l_acc)
        tgt_acc[...] = jnp.zeros_like(tgt_acc)

    # Column ids of this tile (also used for the ragged-tail mask and the gather).
    col_ids = j * block_c + jax.lax.broadcasted_iota(
        jnp.int32, (block_b, block_c), 1)
    col_valid = col_ids < num_cols                               # [Bt, Ct]

    x = x_ref[...].astype(jnp.float32)                           # [Bt, Ct]
    # Mask the ragged column tail (OOB block reads are garbage) so softmax is
    # unaffected: exp(_NEG - m) == 0.
    x = jnp.where(col_valid, x, _NEG)

    # --- online logsumexp over the class axis -----------------------------
    tile_max = jnp.max(x, axis=1, keepdims=True)                 # [Bt, 1]
    m_new = jnp.maximum(m_acc[...], tile_max)
    scale = jnp.exp(m_acc[...] - m_new)                          # [Bt, 1]
    p = jnp.exp(x - m_new)                                       # [Bt, Ct]
    l_acc[...] = l_acc[...] * scale + jnp.sum(p, axis=1, keepdims=True)
    m_acc[...] = m_new

    # --- gather the logit at the target class (one-hot * x as a mask) ------
    # Skip entirely when none of this row block's labels fall in this column
    # tile (SMEM hit table, computed in the wrapper from the tiny label vector).
    @pl.when(hit_ref[i, j] > 0)
    def _gather():
        labels = lbl_ref[...]                                    # [Bt, 1] int32
        hit = col_ids == labels                                  # [Bt, Ct]
        tgt_acc[...] += jnp.sum(jnp.where(hit, x, 0.0), axis=1, keepdims=True)

    # --- finalize per-row loss at the last class tile ----------------------
    @pl.when(j == pl.num_programs(1) - 1)
    def _fin():
        row_ids = i * block_b + jax.lax.broadcasted_iota(
            jnp.int32, (block_b, 1), 0)
        valid = row_ids < num_rows                               # ragged row tail
        per_row = m_acc[...] + jnp.log(l_acc[...]) - tgt_acc[...]
        loss_ref[...] = jnp.where(valid, per_row, 0.0)


def ca_loss(inputs, clothes_labels, pid2clothes, *, alpha=1.0,
            neg_clothes_weight=1.0, block_b=512, block_c=2048):
    """CALoss forward.

    Args:
      inputs: [B, C] clothes-classification logits (f32 or bf16; feed bf16
        directly from the producing layer on v5e/v6e to halve HBM traffic --
        the kernel upcasts per tile and accumulates in f32).
      clothes_labels: [B] int labels.
      pid2clothes: [num_pids, C]; like the PyTorch reference it only contributes
        its width C.
      alpha: loss scale (applied in the wrapper).
      neg_clothes_weight: unused in the reference forward; kept for parity.
    """
    del neg_clothes_weight
    B, C = inputs.shape
    assert pid2clothes.shape[1] == C, "pid2clothes width must equal num_clothes"

    labels = clothes_labels.astype(jnp.int32)

    # Tile sizes. Sublane granularity: 8 for f32, 16 for packed bf16.
    sub = 16 if inputs.dtype == jnp.bfloat16 else 8
    # Cap the row tile so the 'parallel' batch axis has >=2 tiles (v7x: 2 TCs).
    bb = min(_round_up(block_b, sub), max(sub, _round_up(pl.cdiv(B, 2), sub)))
    bc = min(_round_up(block_c, 128), _round_up(C, 128))

    grid_rows = pl.cdiv(B, bb)
    grid_cols = pl.cdiv(C, bc)

    # Tiny [row_tiles, col_tiles] table: does row tile i have any label in col
    # tile j?  Lives in SMEM via scalar prefetch; lets the kernel skip the
    # target-gather work on miss tiles.
    lbl_pad = jnp.full((grid_rows * bb,), -1, dtype=jnp.int32).at[:B].set(labels)
    lbl_tile = lbl_pad.reshape(grid_rows, bb) // bc              # -1 -> tile -1
    col_tile_hit = jnp.any(
        lbl_tile[:, :, None] == jnp.arange(grid_cols, dtype=jnp.int32)[None, None, :],
        axis=1).astype(jnp.int32)                                # [rows, cols]

    labels_2d = labels.reshape(B, 1)

    kernel = functools.partial(_ca_loss_kernel, block_b=bb, block_c=bc,
                               num_rows=B, num_cols=C)

    per_row = pl.pallas_call(
        kernel,
        out_shape=jax.ShapeDtypeStruct((grid_rows * bb, 1), jnp.float32),
        grid_spec=pltpu.PrefetchScalarGridSpec(
            num_scalar_prefetch=1,              # col_tile_hit -> SMEM
            grid=(grid_rows, grid_cols),
            in_specs=[
                pl.BlockSpec((bb, bc), lambda i, j, hit: (i, j)),   # logits tile
                pl.BlockSpec((bb, 1), lambda i, j, hit: (i, 0)),    # labels column
            ],
            out_specs=pl.BlockSpec((bb, 1), lambda i, j, hit: (i, 0)),
            scratch_shapes=[pltpu.VMEM((bb, 1), jnp.float32),   # running max
                            pltpu.VMEM((bb, 1), jnp.float32),   # running sum(exp)
                            pltpu.VMEM((bb, 1), jnp.float32)],  # target logit
        ),
        compiler_params=pltpu.CompilerParams(
            dimension_semantics=("parallel", "arbitrary")),
    )(col_tile_hit, inputs, labels_2d)

    # mean over the B*C elements of the one-hot * log_softmax matrix, scaled by alpha
    return jnp.float32(alpha) * jnp.sum(per_row) / jnp.float32(B * C)


if __name__ == "__main__":
    key = jax.random.PRNGKey(0)
    B, num_clothes, num_pids = 10, 300, 6
    k1, k2, k3 = jax.random.split(key, 3)

    inputs = jax.random.normal(k1, (B, num_clothes), dtype=jnp.float32)
    clothes_labels = jax.random.randint(k2, (B,), 0, num_clothes, dtype=jnp.int32)
    pid2clothes = (jax.random.uniform(k3, (num_pids, num_clothes)) > 0.5
                   ).astype(jnp.float32)

    alpha = 1.0
    # Small explicit tiles so the 2-D grid and all ragged-tail paths are
    # exercised at toy shapes: grid = (2, 3) with partial row and column tiles.
    loss = ca_loss(inputs, clothes_labels, pid2clothes, alpha=alpha,
                   block_b=8, block_c=128)
    jax.block_until_ready(loss)

    # Pure-JAX reference of CALoss.forward
    onehot = jax.nn.one_hot(clothes_labels, num_clothes, dtype=jnp.float32)
    logp = jax.nn.log_softmax(inputs, axis=1)
    ref = jnp.float32(alpha) * (-jnp.mean(onehot * logp))

    assert jnp.allclose(loss, ref, atol=1e-5, rtol=1e-5), (loss, ref)
    print("KERNEL_OK")
</pallas_src>

<mosaic_0001>
module attributes {stable_mosaic.version = 11 : i64} {
  func.func @_ca_loss_kernel(%arg0: i32, %arg1: i32, %arg2: memref<2x3xi32, #tpu.memory_space<smem>>, %arg3: memref<8x128xf32, #tpu.memory_space<vmem>>, %arg4: memref<8x1xi32, #tpu.memory_space<vmem>>, %arg5: memref<8x1xf32, #tpu.memory_space<vmem>>, %arg6: memref<8x1xf32, #tpu.memory_space<vmem>>, %arg7: memref<8x1xf32, #tpu.memory_space<vmem>>, %arg8: memref<8x1xf32, #tpu.memory_space<vmem>>) attributes {dimension_semantics = [#tpu.dimension_semantics<parallel>, #tpu.dimension_semantics<arbitrary>], iteration_bounds = array<i64: 2, 3>, scalar_prefetch = 1 : i64, scratch_operands = 3 : i64, tpu.core_type = #tpu.core_type<tc>, window_params = [{transform_indices = @transform_0, window_bounds = array<i64: 8, 128>}, {transform_indices = @transform_1, window_bounds = array<i64: 8, 1>}, {transform_indices = @transform_2, window_bounds = array<i64: 8, 1>}]} {
    %c0_i32 = arith.constant 0 : i32
    %0 = arith.cmpi eq, %arg1, %c0_i32 : i32
    %1 = arith.extui %0 : i1 to i32
    %c0_i32_0 = arith.constant 0 : i32
    %2 = arith.cmpi ne, %1, %c0_i32_0 : i32
    scf.if %2 {
      %cst_17 = arith.constant -1.000000e+30 : f32
      %38 = vector.broadcast %cst_17 : f32 to vector<8x1xf32>
      %c0_18 = arith.constant 0 : index
      %c0_19 = arith.constant 0 : index
      %39 = vector.load %arg6[%c0_18, %c0_19] : memref<8x1xf32, #tpu.memory_space<vmem>>, vector<8x1xf32>
      tpu.vector_store %arg6[%c0_18, %c0_19], %38 {strides = array<i32>} : memref<8x1xf32, #tpu.memory_space<vmem>>, vector<8x1xf32>,
      %cst_20 = arith.constant 0.000000e+00 : f32
      %40 = vector.broadcast %cst_20 : f32 to vector<8x1xf32>
      %c0_21 = arith.constant 0 : index
      %c0_22 = arith.constant 0 : index
      %41 = vector.load %arg7[%c0_21, %c0_22] : memref<8x1xf32, #tpu.memory_space<vmem>>, vector<8x1xf32>
      tpu.vector_store %arg7[%c0_21, %c0_22], %40 {strides = array<i32>} : memref<8x1xf32, #tpu.memory_space<vmem>>, vector<8x1xf32>,
      %cst_23 = arith.constant 0.000000e+00 : f32
      %42 = vector.broadcast %cst_23 : f32 to vector<8x1xf32>
      %c0_24 = arith.constant 0 : index
      %c0_25 = arith.constant 0 : index
      %43 = vector.load %arg8[%c0_24, %c0_25] : memref<8x1xf32, #tpu.memory_space<vmem>>, vector<8x1xf32>
      tpu.vector_store %arg8[%c0_24, %c0_25], %42 {strides = array<i32>} : memref<8x1xf32, #tpu.memory_space<vmem>>, vector<8x1xf32>,
    } else {
    }
    %c128_i32 = arith.constant 128 : i32
    %3 = arith.muli %arg1, %c128_i32 : i32
    %4 = tpu.iota {dimensions = array<i32: 1>} : vector<8x128xi32>
    %5 = vector.broadcast %3 : i32 to vector<8x128xi32>
    %6 = arith.addi %5, %4 : vector<8x128xi32>
    %c300_i32 = arith.constant 300 : i32
    %7 = vector.broadcast %c300_i32 : i32 to vector<8x128xi32>
    %8 = arith.cmpi slt, %6, %7 : vector<8x128xi32>
    %c0 = arith.constant 0 : index
    %c0_1 = arith.constant 0 : index
    %9 = vector.load %arg3[%c0, %c0_1] : memref<8x128xf32, #tpu.memory_space<vmem>>, vector<8x128xf32>
    %cst = arith.constant -1.000000e+30 : f32
    %10 = vector.broadcast %cst : f32 to vector<8x128xf32>
    %11 = arith.select %8, %9, %10 : vector<8x128xi1>, vector<8x128xf32>
    %cst_2 = arith.constant dense<0xFF800000> : vector<8xf32>
    %12 = vector.multi_reduction <maximumf>, %11, %cst_2 [1] : vector<8x128xf32> to vector<8xf32>
    %13 = vector.shape_cast %12 : vector<8xf32> to vector<8x1xf32>
    %c0_3 = arith.constant 0 : index
    %c0_4 = arith.constant 0 : index
    %14 = vector.load %arg6[%c0_3, %c0_4] : memref<8x1xf32, #tpu.memory_space<vmem>>, vector<8x1xf32>
    %15 = arith.maximumf %14, %13 : vector<8x1xf32>
    %c0_5 = arith.constant 0 : index
    %c0_6 = arith.constant 0 : index
    %16 = vector.load %arg6[%c0_5, %c0_6] : memref<8x1xf32, #tpu.memory_space<vmem>>, vector<8x1xf32>
    %17 = arith.subf %16, %15 : vector<8x1xf32>
    %18 = math.exp %17 : vector<8x1xf32>
    %19 = vector.broadcast %15 : vector<8x1xf32> to vector<8x128xf32>
    %20 = arith.subf %11, %19 : vector<8x128xf32>
    %21 = math.exp %20 : vector<8x128xf32>
    %c0_7 = arith.constant 0 : index
    %c0_8 = arith.constant 0 : index
    %22 = vector.load %arg7[%c0_7, %c0_8] : memref<8x1xf32, #tpu.memory_space<vmem>>, vector<8x1xf32>
    %23 = arith.mulf %22, %18 : vector<8x1xf32>
    %cst_9 = arith.constant dense<0.000000e+00> : vector<8xf32>
    %24 = vector.multi_reduction <add>, %21, %cst_9 [1] : vector<8x128xf32> to vector<8xf32>
    %25 = vector.shape_cast %24 : vector<8xf32> to vector<8x1xf32>
    %26 = arith.addf %23, %25 : vector<8x1xf32>
    %c0_10 = arith.constant 0 : index
    %c0_11 = arith.constant 0 : index
    %27 = vector.load %arg7[%c0_10, %c0_11] : memref<8x1xf32, #tpu.memory_space<vmem>>, vector<8x1xf32>
    tpu.vector_store %arg7[%c0_10, %c0_11], %26 {strides = array<i32>} : memref<8x1xf32, #tpu.memory_space<vmem>>, vector<8x1xf32>,
    %c0_12 = arith.constant 0 : index
    %c0_13 = arith.constant 0 : index
    %28 = vector.load %arg6[%c0_12, %c0_13] : memref<8x1xf32, #tpu.memory_space<vmem>>, vector<8x1xf32>
    tpu.vector_store %arg6[%c0_12, %c0_13], %15 {strides = array<i32>} : memref<8x1xf32, #tpu.memory_space<vmem>>, vector<8x1xf32>,
    %29 = arith.index_cast %arg0 : i32 to index
    %30 = arith.index_cast %arg1 : i32 to index
    %31 = memref.load %arg2[%29, %30] : memref<2x3xi32, #tpu.memory_space<smem>>
    %c0_i32_14 = arith.constant 0 : i32
    %32 = arith.cmpi sgt, %31, %c0_i32_14 : i32
    %33 = arith.extui %32 : i1 to i32
    %c0_i32_15 = arith.constant 0 : i32
    %34 = arith.cmpi ne, %33, %c0_i32_15 : i32
    scf.if %34 {
      %c0_17 = arith.constant 0 : index
      %c0_18 = arith.constant 0 : index
      %38 = vector.load %arg4[%c0_17, %c0_18] : memref<8x1xi32, #tpu.memory_space<vmem>>, vector<8x1xi32>
      %39 = vector.broadcast %38 : vector<8x1xi32> to vector<8x128xi32>
      %40 = arith.cmpi eq, %6, %39 : vector<8x128xi32>
      %c0_19 = arith.constant 0 : index
      %c0_20 = arith.constant 0 : index
      %41 = vector.load %arg8[%c0_19, %c0_20] : memref<8x1xf32, #tpu.memory_space<vmem>>, vector<8x1xf32>
      %cst_21 = arith.constant 0.000000e+00 : f32
      %42 = vector.broadcast %cst_21 : f32 to vector<8x128xf32>
      %43 = arith.select %40, %11, %42 : vector<8x128xi1>, vector<8x128xf32>
      %cst_22 = arith.constant dense<0.000000e+00> : vector<8xf32>
      %44 = vector.multi_reduction <add>, %43, %cst_22 [1] : vector<8x128xf32> to vector<8xf32>
      %45 = vector.shape_cast %44 : vector<8xf32> to vector<8x1xf32>
      %46 = arith.addf %41, %45 : vector<8x1xf32>
      %c0_23 = arith.constant 0 : index
      %c0_24 = arith.constant 0 : index
      %47 = vector.load %arg8[%c0_23, %c0_24] : memref<8x1xf32, #tpu.memory_space<vmem>>, vector<8x1xf32>
      tpu.vector_store %arg8[%c0_23, %c0_24], %46 {strides = array<i32>} : memref<8x1xf32, #tpu.memory_space<vmem>>, vector<8x1xf32>,
    } else {
    }
    %c2_i32 = arith.constant 2 : i32
    %35 = arith.cmpi eq, %arg1, %c2_i32 : i32
    %36 = arith.extui %35 : i1 to i32
    %c0_i32_16 = arith.constant 0 : i32
    %37 = arith.cmpi ne, %36, %c0_i32_16 : i32
    scf.if %37 {
      %c8_i32 = arith.constant 8 : i32
      %38 = arith.muli %arg0, %c8_i32 : i32
      %39 = tpu.iota {dimensions = array<i32: 0>} : vector<8x1xi32>
      %40 = vector.broadcast %38 : i32 to vector<8x1xi32>
      %41 = arith.addi %40, %39 : vector<8x1xi32>
      %c10_i32 = arith.constant 10 : i32
      %42 = vector.broadcast %c10_i32 : i32 to vector<8x1xi32>
      %43 = arith.cmpi slt, %41, %42 : vector<8x1xi32>
      %c0_17 = arith.constant 0 : index
      %c0_18 = arith.constant 0 : index
      %44 = vector.load %arg6[%c0_17, %c0_18] : memref<8x1xf32, #tpu.memory_space<vmem>>, vector<8x1xf32>
      %c0_19 = arith.constant 0 : index
      %c0_20 = arith.constant 0 : index
      %45 = vector.load %arg7[%c0_19, %c0_20] : memref<8x1xf32, #tpu.memory_space<vmem>>, vector<8x1xf32>
      %46 = math.log %45 : vector<8x1xf32>
      %47 = arith.addf %44, %46 : vector<8x1xf32>
      %c0_21 = arith.constant 0 : index
      %c0_22 = arith.constant 0 : index
      %48 = vector.load %arg8[%c0_21, %c0_22] : memref<8x1xf32, #tpu.memory_space<vmem>>, vector<8x1xf32>
      %49 = arith.subf %47, %48 : vector<8x1xf32>
      %cst_23 = arith.constant 0.000000e+00 : f32
      %50 = vector.broadcast %cst_23 : f32 to vector<8x1xf32>
      %51 = arith.select %43, %49, %50 : vector<8x1xi1>, vector<8x1xf32>
      %c0_24 = arith.constant 0 : index
      %c0_25 = arith.constant 0 : index
      %52 = vector.load %arg5[%c0_24, %c0_25] : memref<8x1xf32, #tpu.memory_space<vmem>>, vector<8x1xf32>
      tpu.vector_store %arg5[%c0_24, %c0_25], %51 {strides = array<i32>} : memref<8x1xf32, #tpu.memory_space<vmem>>, vector<8x1xf32>,
    } else {
    }
    return
  }
  func.func @transform_0(%arg0: i32, %arg1: i32, %arg2: memref<2x3xi32, #tpu.memory_space<smem>>) -> (i32, i32) {
    %c0_i32 = arith.constant 0 : i32
    return %arg0, %arg1 : i32, i32
  }
  func.func @transform_1(%arg0: i32, %arg1: i32, %arg2: memref<2x3xi32, #tpu.memory_space<smem>>) -> (i32, i32) {
    %c0_i32 = arith.constant 0 : i32
    %c0_i32_0 = arith.constant 0 : i32
    return %arg0, %c0_i32 : i32, i32
  }
  func.func @transform_2(%arg0: i32, %arg1: i32, %arg2: memref<2x3xi32, #tpu.memory_space<smem>>) -> (i32, i32) {
    %c0_i32 = arith.constant 0 : i32
    %c0_i32_0 = arith.constant 0 : i32
    return %arg0, %c0_i32 : i32, i32
  }
}

</mosaic_0001>

<bundles_post_ra>
// kernel: tpu_custom_call.1
= control target key start
LH: loop header
LB: loop body
LE: loop exit
PB: predicated region body
PF: predicated region fallthrough
CT: control target
= control target key end

     0   :  { %s784_s0 = inlined_call_operand.vmem [shape: s32[2,3], index: 0, kind: input, shape index: {}]   ;;  %s785_s1 = inlined_call_operand.hbm [shape: f32[10,300], index: 1, kind: input, shape index: {}]   ;;  %s786_s2 = inlined_call_operand.vmem [shape: s32[10,1], index: 2, kind: input, shape index: {}]   ;;  %s787_s3 = inlined_call_operand.vmem [shape: f32[16,1], index: 3, kind: output, shape index: {}]  }
   0x1   :  { %s8_s14 = sshll.u32 %s784_s0, 4  ;;  %s9_s14 = int_to_ptr.vmem [resolvable:$true] %s8_s14 }
   0x2   :  { %s473_s15 = scalar_lea.vmem %s9_s14, 32  ;;  %p478_p1 = scmp.lt.s32.totalorder %s9_s14, %s9_s14 }
   0x3   :  { %p474_p0 = scmp.ne.s32.totalorder %s9_s14, %s473_s15  ;;  %p479_p2 = scmp.lt.s32.totalorder %s473_s15, %s473_s15 }
   0x5   :  { %p480_p3 = por %p479_p2, %p478_p1 }
   0x7   :  { %p481_p4 = pnand %p480_p3, %p474_p0 }
   0x9   :  { %484 = shalt.err (!%p481_p4)  }
   0xa   :  { %s585_s16 = smov [#allocation6]  }
   0xb   :  { %11 = dma.vmem_to_smem %s9_s14, 32, %s585_s16, [#allocation5] }
   0xc   :  { %547 = dma.done.wait [#allocation5], 32 }
   0xd   :  { %548 = vsyncadd [#allocation5], 4294967264 }
   0xe   :  { %13 = sfence }
   0xf   :  { %14 = vsyncpa [#allocation8], 0 }
  0x10   :  { %16 = vsyncpa [#allocation8 + $0x1], 0  ;;  %s614_s17 = smov 0   ;;  %s616_s18 = smov 0  }
  0x11   :  { %s618_s0 = smov 0   ;;  %s620_s19 = smov 0  }
  0x12   :  { %s622_s20 = smov 0   ;;  %s624_s21 = smov 0  }
  0x13   :  { %s626_s22 = smov 0   ;;  %s628_s23 = smov 0  }
  0x14 LB: > { %s370_s24 = sadd.s32 4294967295, %s583_s23   ;;  %s31_s25 = sadd.s32 1, %s575_s21  ;;  %s583_s23 = sphi %s628_s23, %s22_s23   ;;  %s579_s22 = sphi %s626_s22, %s799_s22   ;;  %s575_s21 = sphi %s624_s21, %s798_s21   ;;  %s571_s20 = sphi %s622_s20, %s797_s20   ;;  %s567_s19 = sphi %s620_s19, %s796_s19   ;;  %s563_s0 = sphi %s618_s0, %s795_s0   ;;  %s559_s18 = sphi %s616_s18, %s794_s18   ;;  %s555_s17 = sphi %s614_s17, %s793_s17  }
  0x15   : > { %p32_p5 = scmp.ge.s32.totalorder %s31_s25, 3  ;;  %s34_s26 = sadd.s32 1, %s579_s22 }
  0x16   : > { %s43_s27 = sadd.s32 1, %s563_s0  ;;  %p50_p6 = scmp.ne.s32.totalorder %s563_s0, %s559_s18 }
  0x17   : > { %s801_s25 = smov (%p32_p5, %s31_s25), 0  ;;  %s803_s26 = smov (!%p32_p5, %s34_s26), %s579_s22 }
  0x18   : > { %s39_s28 = ssub.s32 %s575_s21, %s801_s25  ;;  %p51_p7 = scmp.eq.s32.totalorder %s583_s23, 0 }
  0x19   : > { %p36_p8 = scmp.ge.s32.totalorder %s803_s26, 2  ;;  %p56_p9 = scmp.ne.s32.totalorder %s559_s18, %s555_s17 }
  0x1a   : > { %p665_p10 = por %p51_p7, %p50_p6  ;;  %p57_p11 = scmp.eq.s32.totalorder %s370_s24, 0 }
  0x1b   : > { %s805_s26 = smov (%p36_p8, %s803_s26), 0  ;;  %p395_p13 = scmp.lt.s32.totalorder %s583_s23, 6 }
  0x1c   : > { %p671_p12 = por %p57_p11, %p56_p9  ;;  %s38_s4 = ssub.s32 %s579_s22, %s805_s26 }
  0x1d   : > { %s40_s5 = sor.u32 %s39_s28, %s38_s4  ;;  %s132_s6 = sand.u32 1, %s563_s0  }
  0x1e   : > { %p41_p0 = scmp.eq.s32.totalorder %s40_s5, 0  ;;  %s374_s7 = sshll.u32 %s132_s6, 3 }
  0x1f   : > { %s388_s8 = smul.u32 3, %s579_s22  ;;  %s136_s12 = scalar_lea.vmem [#allocation7], %s374_s7 }
  0x20   : > { %s681_s9 = scalar_select %p41_p0, %s563_s0, %s43_s27  }
  0x21   : > { %s141_s10 = sadd.s32 %s575_s21, %s388_s8  ;;  %s145_s13 = sshll.u32 %s136_s12, 4  ;;  %s689_s13 = int_to_ptr.vmem [resolvable:$true] %s145_s13 }
  0x22   : > { %s375_s11 = sshll.u32 %s141_s10, 7  ;;  %p695_p1 = pnand %p395_p13, %p665_p10 }
  0x23   : > { %s687_s16 = scalar_lea.hbm %s785_s1, %s375_s11  ;;  %s133_s24 = scalar_lea.sflag [#allocation8], %s132_s6 }
  0x24   : > { %s485_s27 = scalar_lea.hbm %s687_s16, 128  ;;  %p487_p5 = pneg %p695_p1 }
  0x25   : > { %p486_p4 = scmp.ne.s32.totalorder %s687_s16, %s485_s27  ;;  %s490_s4 = scalar_lea.hbm %s785_s1, 768 }
  0x26   : > { %p491_p8 = scmp.lt.u32.totalorder %s687_s16, %s785_s1  ;;  %p492_p9 = scmp.lt.u32.totalorder %s490_s4, %s485_s27 }
  0x27   : > { %p488_p6 = pnand %p487_p5, %p486_p4  ;;  %p494_p11 = scmp.lt.u32.totalorder %s485_s27, %s687_s16 }
  0x28   : > { %p493_p10 = por %p492_p9, %p491_p8 }
  0x29   : > { %p489_p7 = pneg %p488_p6 }
  0x2a   : > { %p495_p13 = por %p494_p11, %p493_p10 }
  0x2c   : > { %p496_p0 = pnand %p495_p13, %p489_p7 }
  0x2e   : > { %499 = shalt.err (!%p496_p0)
}
  0x2f   : > { %s500_s6 = scalar_lea.vmem %s689_s13, 128  ;;  %s586_s8 = smov [#allocation7]  }
  0x30   : > { %p501_p4 = scmp.ne.s32.totalorder %s689_s13, %s500_s6  ;;  %s505_s10 = sshll.u32 %s586_s8, 4  ;;  %s506_s10 = int_to_ptr.vmem [resolvable:$false] %s505_s10 }
  0x31   : > { %s507_s11 = scalar_lea.vmem %s506_s10, 256  ;;  %p508_p3 = scmp.lt.s32.totalorder %s689_s13, %s506_s10 }
  0x32   : > { %p503_p6 = pnand %p501_p4, %p487_p5  ;;  %p509_p8 = scmp.lt.s32.totalorder %s507_s11, %s500_s6 }
  0x34   : > { %p504_p2 = pneg %p503_p6  ;;  %p510_p9 = por %p509_p8, %p508_p3 }
  0x36   : > { %p511_p10 = pnand %p510_p9, %p504_p2 }
  0x38   : > { %514 = shalt.err (!%p511_p10)
}
  0x39   : > { %394 = dma.hbm_to_vmem [thread:$0]  (!%p695_p1), %s687_s16, 128, %s689_s13, %s133_s24  }
  0x3a   : > { %p791_p7 = scmp.lt.s32.totalorder %s583_s23, 7  ;;  %p792_p11 = scmp.ge.s32.totalorder %s583_s23, 1 }
  0x3c   : > { %p158_p5 = pnand %p792_p11, %p791_p7 }
  0x3d   : > { %s163_s12 = sand.u32 (!%p158_p5), 1, %s559_s18  }
  0x3e   : > { %161 = sbr.rel (%p158_p5) target bundleno = 546 (0x222), region = 28  ;;  %s377_s14 = sshll.u32 (!%p158_p5), %s163_s12, 3 }
  0x3f   : > { %s164_s15 = scalar_lea.sflag (!%p158_p5), [#allocation8], %s163_s12  ;;  %s167_s27 = scalar_lea.vmem (!%p158_p5), [#allocation7], %s377_s14 }
  0x45   : > { %550 = dma.done.wait (%p671_p12), %s164_s15, 128  }
  0x46   : > { %552 = vsyncadd (%p671_p12), %s164_s15, 4294967168  ;;  %p191_p2 = scmp.lt.s32.totalorder %s571_s20, 1  ;;  %p380_p1 = scmp.ne.s32.totalorder %s567_s19, 0 }
  0x47   : > { %vm203_vm0 = vcmask (!%p380_p1), 7168   ;;  %v587_v0 = vmov (!%p380_p1), -1e+30   ;;  %v588_v1 = vmov (!%p380_p1), 0.0  }
  0x48   : > { %s192_s17 = scalar_select %p191_p2, %s571_s20, 1 }
  0x49   : > { %202 = sbr.rel (%p380_p1) target bundleno = 80 (0x50), region = 36  ;;  %204 = vst.msk [vmem:[#allocation2] sm:$0xff] (!%p380_p1), %vm203_vm0, %v587_v0  ;;  %205 = vst.msk [vmem:[#allocation3] sm:$0xff] (!%p380_p1), %vm203_vm0, %v588_v1 }
  0x4a   : > { %s378_s13 = sshll.u32 %s192_s17, 3  ;;  %206 = vst.msk [vmem:[#allocation4] sm:$0xff] (!%p380_p1), %vm203_vm0, %v588_v1 }
  0x4b   : > { %s740_s28 = scalar_lea.vmem %s786_s2, %s378_s13  ;;  %s745_s5 = scalar_lea.vmem %s787_s3, %s378_s13 }
  0x50 PF: > { %s381_s30 = sshll.u32 %s567_s19, 7  ;;  %v208_v2 = vlaneseq  ;;  %v213_v6 = vld [vmem:[%s167_s27] sm:$0xff]  ;;  %v589_v8 = vmov 0   ;;  %vm235_vm2 = vcmask 7168   ;;  %s238_s7 = sshra.s32 %s567_s19, 7  ;;  %v230_v19 = vld [vmem:[#allocation3] sm:$0xff] }
  0x51   : > { %v210_v3 = vstv %s381_s30  ;;  %465 = vset.pattern.permute.xlu0 %v589_v8  ;;  %v217_v9 = vld [vmem:[#allocation2] sm:$0xff]  ;;  %s240_s6 = sadd.s32 %s571_s20, %s238_s7  ;;  %s243_s10 = sand.u32 127, %s567_s19 }
  0x52   : > { %v209_v4 = vand.u32 127, %v208_v2  ;;  %s382_s8 = sshll.u32 %s240_s6, 7 }
  0x53   : > { %s244_s11 = sadd.s32 %s382_s8, %s243_s10 }
  0x54   : > { %v211_v5 = vadd.s32 %v210_v3, %v209_v4  ;;  %s245_s12 = sld [smem:[#allocation6 + %s244_s11]] }
  0x56   : > { %vm212_vm1 = vcmp.lt.s32.totalorder %v211_v5, 300 }
  0x57   : > { %v214_v7 = vsel %vm212_vm1, %v213_v6, -1e+30 }
  0x58   : > { %215 = vmax.xlane.f32.xlu0 %v214_v7 }
  0x5a   : > { %p383_p12 = scmp.le.s32.totalorder %s245_s12, 0 }
  0x5b   : > { %v250_v23 = vld [vmem:[%s740_s28] sm:$0xff] (!%p383_p12)  ;;  %v590_v24 = vmov (!%p383_p12), 0   ;;  %v255_v27 = vld [vmem:[#allocation4] sm:$0xff] (!%p383_p12) }
  0xe5   : > { %v216_v10 = vpop.xlane.xlu0 %215 }
  0xe6   : > { %v218_v11 = vmax.f32 %v217_v9, %v216_v10 }
  0xe8   : > { %v219_v12 = vsub.f32 %v217_v9, %v218_v11  ;;  %237 = vst.msk [vmem:[#allocation2] sm:$0xff] %vm235_vm2, %v218_v11  ;;  %224 = vperm.xlu0 %465, %v218_v11  }
  0xea   : > { %v220_v17 = vmul.f32 1.442695, %v219_v12 }
  0xec   : > { %470 = vset.pattern.permute.xlu0 (!%p383_p12), %v590_v24 }
  0xed   : > { %252 = vperm.xlu0 (!%p383_p12), %470, %v250_v23  }
 0x167   : > { %v225_v13 = vpop.permute.xlu0 %224 }
 0x168   : > { %v227_v14 = vsub.f32 %v214_v7, %v225_v13 }
 0x16a   : > { %v228_v15 = vmul.f32 1.442695, %v227_v14 }
 0x16c   : > { %466 = vpow2.f32 %v228_v15  ;;  %v253_v25 = vpop.permute.xlu0 (!%p383_p12), %252 }
 0x16d   : > { %468 = vpow2.f32 %v220_v17  ;;  %vm254_vm3 = vcmp.eq.s32.totalorder (!%p383_p12), %v211_v5, %v253_v25 }
 0x16e   : > { %v256_v26 = vsel (!%p383_p12), %vm254_vm3, %v214_v7, 0.0 }
 0x16f   : > { %257 = vadd.xlane.f32.xlu0 (!%p383_p12), %v256_v26 }
 0x176   : > { %v467_v16 = vpop.eup %466 }
 0x177   : > { %232 = vadd.xlane.f32.xlu1 %v467_v16  ;;  %v469_v18 = vpop.eup %468 }
 0x178   : > { %v231_v20 = vmul.f32 %v469_v18, %v230_v19 }
 0x1fc   : > { %v258_v28 = vpop.xlane.xlu0 (!%p383_p12), %257 }
 0x1fd   : > { %v259_v29 = vadd.f32 (!%p383_p12), %v258_v28, %v255_v27 }
 0x1ff   : > { %260 = vst.msk [vmem:[#allocation4] sm:$0xff] (!%p383_p12), %vm235_vm2, %v259_v29 }
 0x201   : > { %249 = sbr.rel (%p383_p12) target bundleno = 520 (0x208), region = 40 }
 0x204   : > { %v233_v21 = vpop.xlane.xlu1 %232 }
 0x205   : > { %v234_v22 = vadd.f32 %v233_v21, %v231_v20 }
 0x207   : > { %236 = vst.msk [vmem:[#allocation3] sm:$0xff] %vm235_vm2, %v234_v22 }
 0x208 PF: > { %p384_p3 = scmp.ne.s32.totalorder %s567_s19, 2 }
 0x209   : > { %s385_s14 = sshll.u32 (!%p384_p3), %s571_s20, 3  ;;  %v267_v31 = vshrl.u32 (!%p384_p3), %v208_v2, 7  ;;  %v271_v35 = vld [vmem:[#allocation2] sm:$0xff] (!%p384_p3)  ;;  %v276_v37 = vld [vmem:[#allocation4] sm:$0xff] (!%p384_p3) }
 0x20a   : > { %264 = sbr.rel (%p384_p3) target bundleno = 546 (0x222), region = 44  ;;  %v268_v32 = vstv (!%p384_p3), %s385_s14 }
 0x20b   : > { %v269_v34 = vadd.s32 (!%p384_p3), %v268_v32, %v267_v31 }
 0x20d   : > { %vm270_vm4 = vcmp.lt.s32.totalorder (!%p384_p3), %v269_v34, 10 }
 0x20e   : > { %v272_v30 = vld [vmem:[#allocation3] sm:$0xff] (!%p384_p3) }
 0x20f   : > { %471 = vlog2.f32 (!%p384_p3), %v272_v30 }
 0x219   : > { %v472_v33 = vpop.eup %471 }
 0x21a   : > { %v274_v36 = vmul.f32 0.6931472, %v472_v33 }
 0x21c   : > { %v275_v38 = vadd.f32 %v274_v36, %v271_v35 }
 0x21e   : > { %v277_v39 = vsub.f32 %v275_v38, %v276_v37 }
 0x220   : > { %v278_v40 = vsel %vm270_vm4, %v277_v39, 0.0 }
 0x221   : > { %279 = vst.msk [vmem:[%s745_s5] sm:$0xff] %vm235_vm2, %v278_v40 }
 0x222 PF: > { %s22_s23 = sadd.s32 1, %s583_s23   ;;  %s793_s17 = smov %s559_s18 }
 0x223   : > { %p19_p13 = scmp.ge.s32.totalorder %s22_s23, 8   ;;  %s794_s18 = smov %s563_s0 }
 0x224   : > { %s795_s0 = smov %s681_s9  ;;  %s796_s19 = smov %s575_s21 }
 0x225   : > { %s797_s20 = smov %s579_s22  ;;  %s798_s21 = smov %s801_s25 }
 0x226   : > { %s799_s22 = smov %s805_s26  ;;  %21 = sbr.rel (!%p19_p13) target bundleno = 20 (0x14), region = 83 }
 0x22d   :  { %299 = vsyncpa [#allocation8], 1 }
 0x22e   :  { %301 = vsyncpa [#allocation8 + $0x1], 1 }

</bundles_post_ra>
